<compile_context>
chip_gen: v7x
topology: tpu7x:2x2x1
jax: 0.10.0
libtpu: 0.0.40
codegen_flags: <defaults>
</compile_context>

<pallas_src>
import functools

import jax
import jax.numpy as jnp
import numpy as np
from jax.experimental import pallas as pl
from jax.experimental.pallas import tpu as pltpu


# ----------------------------------------------------------------------------
# Pallas kernel: masked cross-entropy + smooth-L1 reductions over anchors
# ----------------------------------------------------------------------------
def _multibox_loss_kernel(slab_ref, out_ref, loc_acc, cls_acc, pos_acc, *,
                          num_classes):
    C = num_classes
    i = pl.program_id(0)

    @pl.when(i == 0)
    def _init():
        loc_acc[...] = jnp.zeros_like(loc_acc)
        cls_acc[...] = jnp.zeros_like(cls_acc)
        pos_acc[...] = jnp.zeros_like(pos_acc)

    slab = slab_ref[...]                    # (F_pad, TILE) f32
    conf = slab[0:C, :]                     # (C, TILE) class logits
    ploc = slab[C:C + 4, :]                 # (4, TILE)
    gloc = slab[C + 4:C + 8, :]             # (4, TILE)
    lab = slab[C + 8:C + 9, :]              # (1, TILE) label as float (0 = bg)
    cmask = slab[C + 9:C + 10, :]           # (1, TILE) hard-neg-mining mask

    # --- cross entropy: log_softmax over the class (sublane) axis ---
    m = jnp.max(conf, axis=0, keepdims=True)
    z = conf - m
    lse = jnp.log(jnp.sum(jnp.exp(z), axis=0, keepdims=True))
    logp = z - lse                                          # (C, TILE)

    lab_i = lab.astype(jnp.int32)                           # (1, TILE)
    cls_ids = jax.lax.broadcasted_iota(jnp.int32, logp.shape, 0)
    onehot = (cls_ids == lab_i).astype(jnp.float32)         # in-kernel one-hot
    ce = -jnp.sum(logp * onehot, axis=0, keepdims=True)     # (1, TILE)

    pos = (lab > 0.5).astype(jnp.float32)                   # (1, TILE)

    # --- smooth L1 localisation loss (positives only), beta = 1.0 ---
    diff = jnp.abs(ploc - gloc)
    sl1 = jnp.where(diff < 1.0, 0.5 * diff * diff, diff - 0.5)
    loc_term = jnp.where(pos > 0.0,
                         jnp.sum(sl1, axis=0, keepdims=True),
                         0.0)                               # (1, TILE)

    # per-lane partial sums (no cross-lane reduction per step)
    loc_acc[...] += loc_term
    cls_acc[...] += ce * cmask
    pos_acc[...] += pos

    @pl.when(i == pl.num_programs(0) - 1)
    def _finalize():
        out_ref[0] = jnp.sum(loc_acc[...])
        out_ref[1] = jnp.sum(cls_acc[...])
        out_ref[2] = jnp.sum(pos_acc[...])
        out_ref[3] = 0.0


def multibox_loss_pallas(confidence, predicted_locations, gt_locations,
                         labels, mask, *, tile_cols=8192):
    """confidence (B,A,C), predicted_locations (B,A,4), gt_locations (B,A,4),
    labels (B,A) int, mask (B,A) bool (hard-negative-mining selection)."""
    B, A, C = confidence.shape
    BA = B * A
    f32 = jnp.float32

    # feature-major, lane-dense packed slab: (C+10, BA)
    conf_t = confidence.reshape(BA, C).T.astype(f32)
    ploc_t = predicted_locations.reshape(BA, 4).T.astype(f32)
    gloc_t = gt_locations.reshape(BA, 4).T.astype(f32)
    lab_t = labels.reshape(1, BA).astype(f32)
    mask_t = mask.reshape(1, BA).astype(f32)
    slab = jnp.concatenate([conf_t, ploc_t, gloc_t, lab_t, mask_t], axis=0)

    nfeat = slab.shape[0]                       # C + 10
    nfeat_pad = -(-nfeat // 8) * 8              # sublane-aligned
    tile = min(tile_cols, -(-BA // 128) * 128)  # lane tile, multiple of 128
    cols = -(-BA // tile) * tile
    pad_rows = nfeat_pad - nfeat
    pad_cols = cols - BA
    if pad_rows or pad_cols:
        # padded columns: label=0, mask=0, zeros everywhere -> contribute 0
        slab = jnp.pad(slab, ((0, pad_rows), (0, pad_cols)))

    sums = pl.pallas_call(
        functools.partial(_multibox_loss_kernel, num_classes=C),
        out_shape=jax.ShapeDtypeStruct((4,), f32),
        grid_spec=pltpu.PrefetchScalarGridSpec(
            num_scalar_prefetch=0,
            grid=(cols // tile,),
            in_specs=[pl.BlockSpec((nfeat_pad, tile), lambda i: (0, i))],
            out_specs=pl.BlockSpec(memory_space=pltpu.MemorySpace.SMEM),
            scratch_shapes=[pltpu.VMEM((1, tile), f32),
                            pltpu.VMEM((1, tile), f32),
                            pltpu.VMEM((1, tile), f32)],
        ),
        compiler_params=pltpu.CompilerParams(
            dimension_semantics=("arbitrary",)),
    )(slab)

    num_pos = jnp.maximum(1.0, sums[2])
    localisation_loss = sums[0] / (num_pos * 4.0)
    classification_loss = sums[1] / (num_pos * 4.0)
    return localisation_loss, classification_loss


# ----------------------------------------------------------------------------
# Target building + hard negative mining (the torch.no_grad() block) -- glue.
# ----------------------------------------------------------------------------
def _corners_to_centers(boxes):
    cx = (boxes[..., 0] + boxes[..., 2]) * 0.5
    cy = (boxes[..., 1] + boxes[..., 3]) * 0.5
    w = boxes[..., 2] - boxes[..., 0]
    h = boxes[..., 3] - boxes[..., 1]
    return cx, cy, w, h


def _iou(anchors, boxes):
    a = anchors[:, None, :]
    b = boxes[None, :, :]
    ix1 = jnp.maximum(a[..., 0], b[..., 0])
    iy1 = jnp.maximum(a[..., 1], b[..., 1])
    ix2 = jnp.minimum(a[..., 2], b[..., 2])
    iy2 = jnp.minimum(a[..., 3], b[..., 3])
    inter = jnp.clip(ix2 - ix1, 0.0) * jnp.clip(iy2 - iy1, 0.0)
    area_a = (a[..., 2] - a[..., 0]) * (a[..., 3] - a[..., 1])
    area_b = (b[..., 2] - b[..., 0]) * (b[..., 3] - b[..., 1])
    return inter / (area_a + area_b - inter + 1e-8)


# TODO(synk): box_utils.match_anchors is an external dependency that was not
# provided; this is a standard IoU-threshold matcher + SSD-style encoding used
# as its stand-in (best-anchor-per-gt forcing / variances omitted).
def match_anchors(gt_boxes, gt_labels, gt_valid, anchors, iou_threshold):
    overlaps = _iou(anchors, gt_boxes)                     # (A, G)
    overlaps = jnp.where(gt_valid[None, :], overlaps, -1.0)
    best_iou = jnp.max(overlaps, axis=1)
    best_gt = jnp.argmax(overlaps, axis=1)
    labels = jnp.where(best_iou >= iou_threshold,
                       gt_labels[best_gt].astype(jnp.int32), 0)
    matched = gt_boxes[best_gt]                            # (A, 4)
    acx, acy, aw, ah = _corners_to_centers(anchors)
    gcx, gcy, gw, gh = _corners_to_centers(matched)
    gw = jnp.maximum(gw, 1e-6)
    gh = jnp.maximum(gh, 1e-6)
    loc = jnp.stack([(gcx - acx) / aw, (gcy - acy) / ah,
                     jnp.log(gw / aw), jnp.log(gh / ah)], axis=-1)
    loc = jnp.where((labels > 0)[:, None], loc, 0.0)       # keep bg rows finite
    return labels, loc


def build_targets(gts, counts, anchors, iou_threshold):
    G = gts.shape[1]

    def per_image(gt, cnt):
        valid = jnp.arange(G) < cnt
        labels, loc = match_anchors(gt[:, :4], gt[:, 4], valid, anchors,
                                    iou_threshold)
        return loc, labels

    gt_locations, labels = jax.vmap(per_image)(gts, counts)
    return gt_locations, labels


def hard_negative_mining(loss, labels, neg_pos_ratio):
    """Standard SSD hard negative mining (per-image top-k negatives by loss)."""
    pos_mask = labels > 0
    num_pos = jnp.sum(pos_mask.astype(jnp.int32), axis=1, keepdims=True)
    num_neg = num_pos * neg_pos_ratio
    loss = jnp.where(pos_mask, -jnp.inf, loss)
    idx = jnp.argsort(-loss, axis=1)         # descending by loss
    orders = jnp.argsort(idx, axis=1)        # rank of each anchor
    neg_mask = orders < num_neg
    return pos_mask | neg_mask


class MultiBoxLossPallas:
    """Mirror of MultiBoxLoss.forward (SSD multibox loss, forward only)."""

    def __init__(self, positive_threshold, neg_pos_ratio=3):
        self.positive_threshold = positive_threshold
        self.neg_pos_ratio = neg_pos_ratio

    def __call__(self, confidence, predicted_locations, gts, counts, anchors,
                 images=None, predicted_phase=None):
        # torch.no_grad() block: matching + hard negative mining (plain JAX)
        gt_locations, labels = build_targets(gts, counts, anchors,
                                             self.positive_threshold)
        bg_loss = -jax.nn.log_softmax(confidence, axis=2)[:, :, 0]
        mask = hard_negative_mining(bg_loss, labels, self.neg_pos_ratio)
        # differentiable loss math -> Pallas kernel
        return multibox_loss_pallas(confidence, predicted_locations,
                                    gt_locations, labels, mask)


# ----------------------------------------------------------------------------
# Pure-JAX reference of the loss math (for verification)
# ----------------------------------------------------------------------------
def reference_loss(confidence, ploc, gloc, labels, mask):
    logp = jax.nn.log_softmax(confidence.astype(jnp.float32), axis=-1)
    pos = labels > 0
    num_pos = jnp.maximum(1.0, jnp.sum(pos.astype(jnp.float32)))
    ce = -jnp.take_along_axis(logp, labels[..., None].astype(jnp.int32),
                              axis=-1)[..., 0]
    cls_loss = jnp.sum(ce * mask.astype(jnp.float32)) / (num_pos * 4.0)
    diff = jnp.abs(ploc - gloc)
    sl1 = jnp.where(diff < 1.0, 0.5 * diff * diff, diff - 0.5)
    loc_loss = jnp.sum(sl1 * pos[..., None].astype(jnp.float32)) / (num_pos * 4.0)
    return loc_loss, cls_loss


# ----------------------------------------------------------------------------
if __name__ == "__main__":
    key = jax.random.PRNGKey(0)
    k_conf, k_loc = jax.random.split(key)

    B, A, C, G = 2, 128, 8, 8          # C = num_classes incl. background

    # deterministic anchor grid: 8x8 centers x 2 scales = 128 anchors (corners)
    cxs, cys = jnp.meshgrid((jnp.arange(8) + 0.5) / 8.0,
                            (jnp.arange(8) + 0.5) / 8.0, indexing="ij")
    centers = jnp.stack([cxs.reshape(-1), cys.reshape(-1)], axis=-1)  # (64, 2)
    anchors = []
    for s in (0.15, 0.30):
        anchors.append(jnp.concatenate([centers - s / 2.0, centers + s / 2.0],
                                       axis=-1))
    anchors = jnp.clip(jnp.concatenate(anchors, axis=0), 0.0, 1.0)    # (128, 4)

    # synthetic ground truth: copy a few anchors so IoU==1 guarantees positives
    counts = jnp.array([3, 5], dtype=jnp.int32)
    gts_np = np.zeros((B, G, 5), dtype=np.float32)
    anchors_np = np.asarray(anchors)
    for b in range(B):
        for g in range(int(counts[b])):
            idx = (b * 17 + g * 11) % A
            gts_np[b, g, :4] = anchors_np[idx]
            gts_np[b, g, 4] = 1 + (g % (C - 1))
    gts = jnp.asarray(gts_np)

    confidence = jax.random.normal(k_conf, (B, A, C), dtype=jnp.float32)
    predicted_locations = 0.1 * jax.random.normal(k_loc, (B, A, 4),
                                                  dtype=jnp.float32)

    loss_fn = MultiBoxLossPallas(positive_threshold=0.5, neg_pos_ratio=3)
    loc_loss, cls_loss = loss_fn(confidence, predicted_locations, gts, counts,
                                 anchors)
    loc_loss, cls_loss = jax.block_until_ready((loc_loss, cls_loss))

    # verify against a pure-JAX reference of the same math
    gt_locations, labels = build_targets(gts, counts, anchors, 0.5)
    bg_loss = -jax.nn.log_softmax(confidence, axis=2)[:, :, 0]
    mask = hard_negative_mining(bg_loss, labels, 3)
    ref_loc, ref_cls = reference_loss(confidence, predicted_locations,
                                      gt_locations, labels, mask)
    assert np.allclose(np.asarray(loc_loss), np.asarray(ref_loc),
                       rtol=1e-4, atol=1e-5)
    assert np.allclose(np.asarray(cls_loss), np.asarray(ref_cls),
                       rtol=1e-4, atol=1e-5)

    print("KERNEL_OK")
</pallas_src>

<mosaic_0001>
module attributes {stable_mosaic.version = 11 : i64} {
  func.func @_multibox_loss_kernel(%arg0: i32, %arg1: memref<24x256xf32, #tpu.memory_space<vmem>>, %arg2: memref<4xf32, #tpu.memory_space<smem>>, %arg3: memref<1x256xf32, #tpu.memory_space<vmem>>, %arg4: memref<1x256xf32, #tpu.memory_space<vmem>>, %arg5: memref<1x256xf32, #tpu.memory_space<vmem>>) attributes {dimension_semantics = [#tpu.dimension_semantics<arbitrary>], iteration_bounds = array<i64: 1>, scalar_prefetch = 0 : i64, scratch_operands = 3 : i64, tpu.core_type = #tpu.core_type<tc>, window_params = [{transform_indices = @transform_0, window_bounds = array<i64: 24, 256>}, {transform_indices = @transform_1, window_bounds = array<i64: 4>}]} {
    %c0_i32 = arith.constant 0 : i32
    %0 = arith.cmpi eq, %arg0, %c0_i32 : i32
    %1 = arith.extui %0 : i1 to i32
    %c0_i32_0 = arith.constant 0 : i32
    %2 = arith.cmpi ne, %1, %c0_i32_0 : i32
    scf.if %2 {
      %cst_26 = arith.constant 0.000000e+00 : f32
      %63 = vector.broadcast %cst_26 : f32 to vector<1x256xf32>
      %c0_27 = arith.constant 0 : index
      %c0_28 = arith.constant 0 : index
      %64 = vector.load %arg3[%c0_27, %c0_28] : memref<1x256xf32, #tpu.memory_space<vmem>>, vector<1x256xf32>
      tpu.vector_store %arg3[%c0_27, %c0_28], %63 {strides = array<i32>} : memref<1x256xf32, #tpu.memory_space<vmem>>, vector<1x256xf32>,
      %cst_29 = arith.constant 0.000000e+00 : f32
      %65 = vector.broadcast %cst_29 : f32 to vector<1x256xf32>
      %c0_30 = arith.constant 0 : index
      %c0_31 = arith.constant 0 : index
      %66 = vector.load %arg4[%c0_30, %c0_31] : memref<1x256xf32, #tpu.memory_space<vmem>>, vector<1x256xf32>
      tpu.vector_store %arg4[%c0_30, %c0_31], %65 {strides = array<i32>} : memref<1x256xf32, #tpu.memory_space<vmem>>, vector<1x256xf32>,
      %cst_32 = arith.constant 0.000000e+00 : f32
      %67 = vector.broadcast %cst_32 : f32 to vector<1x256xf32>
      %c0_33 = arith.constant 0 : index
      %c0_34 = arith.constant 0 : index
      %68 = vector.load %arg5[%c0_33, %c0_34] : memref<1x256xf32, #tpu.memory_space<vmem>>, vector<1x256xf32>
      tpu.vector_store %arg5[%c0_33, %c0_34], %67 {strides = array<i32>} : memref<1x256xf32, #tpu.memory_space<vmem>>, vector<1x256xf32>,
    } else {
    }
    %c0 = arith.constant 0 : index
    %c0_1 = arith.constant 0 : index
    %3 = vector.load %arg1[%c0, %c0_1] : memref<24x256xf32, #tpu.memory_space<vmem>>, vector<24x256xf32>
    %4 = vector.extract_strided_slice %3 {offsets = [0, 0], sizes = [8, 256], strides = [1, 1]} : vector<24x256xf32> to vector<8x256xf32>
    %5 = vector.extract_strided_slice %3 {offsets = [8, 0], sizes = [4, 256], strides = [1, 1]} : vector<24x256xf32> to vector<4x256xf32>
    %6 = vector.extract_strided_slice %3 {offsets = [12, 0], sizes = [4, 256], strides = [1, 1]} : vector<24x256xf32> to vector<4x256xf32>
    %7 = vector.extract_strided_slice %3 {offsets = [16, 0], sizes = [1, 256], strides = [1, 1]} : vector<24x256xf32> to vector<1x256xf32>
    %8 = vector.extract_strided_slice %3 {offsets = [17, 0], sizes = [1, 256], strides = [1, 1]} : vector<24x256xf32> to vector<1x256xf32>
    %cst = arith.constant dense<0xFF800000> : vector<256xf32>
    %9 = vector.multi_reduction <maximumf>, %4, %cst [0] : vector<8x256xf32> to vector<256xf32>
    %10 = vector.shape_cast %9 : vector<256xf32> to vector<1x256xf32>
    %11 = vector.broadcast %10 : vector<1x256xf32> to vector<8x256xf32>
    %12 = arith.subf %4, %11 : vector<8x256xf32>
    %13 = math.exp %12 : vector<8x256xf32>
    %cst_2 = arith.constant dense<0.000000e+00> : vector<256xf32>
    %14 = vector.multi_reduction <add>, %13, %cst_2 [0] : vector<8x256xf32> to vector<256xf32>
    %15 = vector.shape_cast %14 : vector<256xf32> to vector<1x256xf32>
    %16 = math.log %15 : vector<1x256xf32>
    %17 = vector.broadcast %16 : vector<1x256xf32> to vector<8x256xf32>
    %18 = arith.subf %12, %17 : vector<8x256xf32>
    %19 = arith.fptosi %7 : vector<1x256xf32> to vector<1x256xi32>
    %20 = tpu.iota {dimensions = array<i32: 0>} : vector<8x256xi32>
    %21 = vector.broadcast %19 : vector<1x256xi32> to vector<8x256xi32>
    %22 = arith.cmpi eq, %20, %21 : vector<8x256xi32>
    %23 = arith.extui %22 : vector<8x256xi1> to vector<8x256xi32>
    %24 = arith.sitofp %23 : vector<8x256xi32> to vector<8x256xf32>
    %25 = arith.mulf %18, %24 : vector<8x256xf32>
    %cst_3 = arith.constant dense<0.000000e+00> : vector<256xf32>
    %26 = vector.multi_reduction <add>, %25, %cst_3 [0] : vector<8x256xf32> to vector<256xf32>
    %27 = vector.shape_cast %26 : vector<256xf32> to vector<1x256xf32>
    %cst_4 = arith.constant 0.000000e+00 : f32
    %28 = vector.broadcast %cst_4 : f32 to vector<1x256xf32>
    %29 = arith.subf %28, %27 : vector<1x256xf32>
    %cst_5 = arith.constant 5.000000e-01 : f32
    %30 = vector.broadcast %cst_5 : f32 to vector<1x256xf32>
    %31 = arith.cmpf ogt, %7, %30 : vector<1x256xf32>
    %32 = arith.extui %31 : vector<1x256xi1> to vector<1x256xi32>
    %33 = arith.sitofp %32 : vector<1x256xi32> to vector<1x256xf32>
    %34 = arith.subf %5, %6 : vector<4x256xf32>
    %35 = math.absf %34 : vector<4x256xf32>
    %cst_6 = arith.constant 1.000000e+00 : f32
    %36 = vector.broadcast %cst_6 : f32 to vector<4x256xf32>
    %37 = arith.cmpf olt, %35, %36 : vector<4x256xf32>
    %cst_7 = arith.constant 5.000000e-01 : f32
    %38 = vector.broadcast %cst_7 : f32 to vector<4x256xf32>
    %39 = arith.mulf %38, %35 : vector<4x256xf32>
    %40 = arith.mulf %39, %35 : vector<4x256xf32>
    %cst_8 = arith.constant 5.000000e-01 : f32
    %41 = vector.broadcast %cst_8 : f32 to vector<4x256xf32>
    %42 = arith.subf %35, %41 : vector<4x256xf32>
    %43 = arith.select %37, %40, %42 : vector<4x256xi1>, vector<4x256xf32>
    %cst_9 = arith.constant 0.000000e+00 : f32
    %44 = vector.broadcast %cst_9 : f32 to vector<1x256xf32>
    %45 = arith.cmpf ogt, %33, %44 : vector<1x256xf32>
    %cst_10 = arith.constant dense<0.000000e+00> : vector<256xf32>
    %46 = vector.multi_reduction <add>, %43, %cst_10 [0] : vector<4x256xf32> to vector<256xf32>
    %47 = vector.shape_cast %46 : vector<256xf32> to vector<1x256xf32>
    %cst_11 = arith.constant 0.000000e+00 : f32
    %48 = vector.broadcast %cst_11 : f32 to vector<1x256xf32>
    %49 = arith.select %45, %47, %48 : vector<1x256xi1>, vector<1x256xf32>
    %c0_12 = arith.constant 0 : index
    %c0_13 = arith.constant 0 : index
    %50 = vector.load %arg3[%c0_12, %c0_13] : memref<1x256xf32, #tpu.memory_space<vmem>>, vector<1x256xf32>
    %51 = arith.addf %50, %49 : vector<1x256xf32>
    %c0_14 = arith.constant 0 : index
    %c0_15 = arith.constant 0 : index
    %52 = vector.load %arg3[%c0_14, %c0_15] : memref<1x256xf32, #tpu.memory_space<vmem>>, vector<1x256xf32>
    tpu.vector_store %arg3[%c0_14, %c0_15], %51 {strides = array<i32>} : memref<1x256xf32, #tpu.memory_space<vmem>>, vector<1x256xf32>,
    %c0_16 = arith.constant 0 : index
    %c0_17 = arith.constant 0 : index
    %53 = vector.load %arg4[%c0_16, %c0_17] : memref<1x256xf32, #tpu.memory_space<vmem>>, vector<1x256xf32>
    %54 = arith.mulf %29, %8 : vector<1x256xf32>
    %55 = arith.addf %53, %54 : vector<1x256xf32>
    %c0_18 = arith.constant 0 : index
    %c0_19 = arith.constant 0 : index
    %56 = vector.load %arg4[%c0_18, %c0_19] : memref<1x256xf32, #tpu.memory_space<vmem>>, vector<1x256xf32>
    tpu.vector_store %arg4[%c0_18, %c0_19], %55 {strides = array<i32>} : memref<1x256xf32, #tpu.memory_space<vmem>>, vector<1x256xf32>,
    %c0_20 = arith.constant 0 : index
    %c0_21 = arith.constant 0 : index
    %57 = vector.load %arg5[%c0_20, %c0_21] : memref<1x256xf32, #tpu.memory_space<vmem>>, vector<1x256xf32>
    %58 = arith.addf %57, %33 : vector<1x256xf32>
    %c0_22 = arith.constant 0 : index
    %c0_23 = arith.constant 0 : index
    %59 = vector.load %arg5[%c0_22, %c0_23] : memref<1x256xf32, #tpu.memory_space<vmem>>, vector<1x256xf32>
    tpu.vector_store %arg5[%c0_22, %c0_23], %58 {strides = array<i32>} : memref<1x256xf32, #tpu.memory_space<vmem>>, vector<1x256xf32>,
    %c0_i32_24 = arith.constant 0 : i32
    %60 = arith.cmpi eq, %arg0, %c0_i32_24 : i32
    %61 = arith.extui %60 : i1 to i32
    %c0_i32_25 = arith.constant 0 : i32
    %62 = arith.cmpi ne, %61, %c0_i32_25 : i32
    scf.if %62 {
      %c0_26 = arith.constant 0 : index
      %c0_27 = arith.constant 0 : index
      %63 = vector.load %arg3[%c0_26, %c0_27] : memref<1x256xf32, #tpu.memory_space<vmem>>, vector<1x256xf32>
      %64 = vector.shape_cast %63 : vector<1x256xf32> to vector<1x1x256xf32>
      %cst_28 = arith.constant dense<0.000000e+00> : vector<1xf32>
      %65 = vector.multi_reduction <add>, %64, %cst_28 [1, 2] : vector<1x1x256xf32> to vector<1xf32>
      %66 = vector.shape_cast %65 : vector<1xf32> to vector<1x1x1xf32>
      %67 = vector.extract %66[0, 0, 0] : f32 from vector<1x1x1xf32>
      %c0_29 = arith.constant 0 : index
      %68 = memref.load %arg2[%c0_29] : memref<4xf32, #tpu.memory_space<smem>>
      memref.store %67, %arg2[%c0_29] : memref<4xf32, #tpu.memory_space<smem>>
      %c0_30 = arith.constant 0 : index
      %c0_31 = arith.constant 0 : index
      %69 = vector.load %arg4[%c0_30, %c0_31] : memref<1x256xf32, #tpu.memory_space<vmem>>, vector<1x256xf32>
      %70 = vector.shape_cast %69 : vector<1x256xf32> to vector<1x1x256xf32>
      %cst_32 = arith.constant dense<0.000000e+00> : vector<1xf32>
      %71 = vector.multi_reduction <add>, %70, %cst_32 [1, 2] : vector<1x1x256xf32> to vector<1xf32>
      %72 = vector.shape_cast %71 : vector<1xf32> to vector<1x1x1xf32>
      %73 = vector.extract %72[0, 0, 0] : f32 from vector<1x1x1xf32>
      %c1 = arith.constant 1 : index
      %74 = memref.load %arg2[%c1] : memref<4xf32, #tpu.memory_space<smem>>
      memref.store %73, %arg2[%c1] : memref<4xf32, #tpu.memory_space<smem>>
      %c0_33 = arith.constant 0 : index
      %c0_34 = arith.constant 0 : index
      %75 = vector.load %arg5[%c0_33, %c0_34] : memref<1x256xf32, #tpu.memory_space<vmem>>, vector<1x256xf32>
      %76 = vector.shape_cast %75 : vector<1x256xf32> to vector<1x1x256xf32>
      %cst_35 = arith.constant dense<0.000000e+00> : vector<1xf32>
      %77 = vector.multi_reduction <add>, %76, %cst_35 [1, 2] : vector<1x1x256xf32> to vector<1xf32>
      %78 = vector.shape_cast %77 : vector<1xf32> to vector<1x1x1xf32>
      %79 = vector.extract %78[0, 0, 0] : f32 from vector<1x1x1xf32>
      %c2 = arith.constant 2 : index
      %80 = memref.load %arg2[%c2] : memref<4xf32, #tpu.memory_space<smem>>
      memref.store %79, %arg2[%c2] : memref<4xf32, #tpu.memory_space<smem>>
      %cst_36 = arith.constant 0.000000e+00 : f32
      %c3 = arith.constant 3 : index
      %81 = memref.load %arg2[%c3] : memref<4xf32, #tpu.memory_space<smem>>
      memref.store %cst_36, %arg2[%c3] : memref<4xf32, #tpu.memory_space<smem>>
    } else {
    }
    return
  }
  func.func @transform_0(%arg0: i32) -> (i32, i32) {
    %c0_i32 = arith.constant 0 : i32
    %c0_i32_0 = arith.constant 0 : i32
    return %c0_i32, %arg0 : i32, i32
  }
  func.func @transform_1(%arg0: i32) -> i32 {
    %c0_i32 = arith.constant 0 : i32
    %c0_i32_0 = arith.constant 0 : i32
    return %c0_i32 : i32
  }
}

</mosaic_0001>

<bundles_post_ra>
// kernel: tpu_custom_call.1
= control target key start
LH: loop header
LB: loop body
LE: loop exit
PB: predicated region body
PF: predicated region fallthrough
CT: control target
= control target key end

     0   :  { %6 = vsyncpa [#allocation6], 0  ;;  %s507_s0 = inlined_call_operand.hbm [shape: f32[24,256], index: 0, kind: input, shape index: {}]   ;;  %s508_s1 = inlined_call_operand.hbm [shape: f32[4], index: 1, kind: output, shape index: {}]  }
   0x1   :  { %7 = vsyncpa [#allocation7], 0  ;;  %s390_s6 = smov [#allocation5]   ;;  %s354_s10 = scalar_lea.hbm %s507_s0, 768 }
   0x2   :  { %s13_s7 = sshll.u32 %s390_s6, 4  ;;  %p355_p0 = scmp.ne.s32.totalorder %s507_s0, %s354_s10  ;;  %s14_s7 = int_to_ptr.vmem [resolvable:$true] %s13_s7 }
   0x3   :  { %p358_p1 = scmp.lt.u32.totalorder %s354_s10, %s507_s0 }
   0x5   :  { %p360_p2 = pnand %p358_p1, %p355_p0 }
   0x7   :  { %363 = shalt.err (!%p360_p2)
}
   0x8   :  { %s364_s15 = scalar_lea.vmem %s14_s7, 768  ;;  %p369_p4 = scmp.lt.s32.totalorder %s14_s7, %s14_s7 }
   0x9   :  { %p365_p3 = scmp.ne.s32.totalorder %s14_s7, %s364_s15  ;;  %p370_p5 = scmp.lt.s32.totalorder %s364_s15, %s364_s15 }
   0xb   :  { %p371_p6 = por %p370_p5, %p369_p4 }
   0xd   :  { %p372_p7 = pnand %p371_p6, %p365_p3 }
   0xf   :  { %375 = shalt.err (!%p372_p7)
}
  0x10   :  { %s391_s16 = smov 256   ;;  %s392_s17 = smov 16  }
  0x11   :  { %19 = dma.hbm_to_vmem [thread:$0]  %s507_s0, 768, %s14_s7, [#allocation6], %s391_s16, %s391_s16, %s392_s17  }
  0x12   :  { %386 = dma.done.wait [#allocation6], 768  }
  0x13   :  { %387 = vsyncadd [#allocation6], 4294966528  ;;  %v27_v0 = vlaneseq  ;;  %v393_v2 = vmov 0.0   ;;  %v34_v3 = vld [vmem:[#allocation5] sm:$0xff]  ;;  %v35_v4 = vld [vmem:[#allocation5 + $0x8] sm:$0xff]  ;;  %vm138_vm5 = vcmask 1043456  }
  0x14   :  { %v36_v5 = vld [vmem:[#allocation5 + $0x10] sm:$0xff]  ;;  %v37_v6 = vld [vmem:[#allocation5 + $0x18] sm:$0xff]  ;;  %v40_v7 = vrot.slane %v34_v3, 4  ;;  %v46_v8 = vrot.slane %v35_v4, 4  ;;  %v394_v10 = vmov 1966171168  }
  0x15   :  { %vm419_vm0 = vcmp.lt.s32.totalorder %v27_v0, 256  ;;  %v118_v9 = vrot.slane %v36_v5, 4  ;;  %v160_v11 = vunpack.c.l.s4 %v394_v10  ;;  %v432_v12 = vld [vmem:[#allocation5 + $0x20] sm:$0xff]  ;;  %v434_v13 = vld [vmem:[#allocation5 + $0x28] sm:$0xff]  ;;  %v119_v16 = vrot.slane %v37_v6, 4  ;;  %s395_s0 = smov 0.0  }
  0x16   :  { %31 = vst.msk [vmem:[#allocation2] sm:$0x3] %vm419_vm0, %v393_v2  ;;  %32 = vst.msk [vmem:[#allocation3] sm:$0x3] %vm419_vm0, %v393_v2  ;;  %v41_v14 = vmax.f32 %v34_v3, %v40_v7  ;;  %v47_v15 = vmax.f32 %v35_v4, %v46_v8  ;;  %vm110_vm1 = vcmp.gt.f32.partialorder %v432_v12, 0.5  ;;  %vm111_vm2 = vcmp.gt.f32.partialorder %v434_v13, 0.5 }
  0x17   :  { %33 = vst.msk [vmem:[#allocation4] sm:$0x3] %vm419_vm0, %v393_v2  ;;  %v122_v17 = vsub.f32 %v36_v5, %v118_v9  ;;  %v161_v20 = vunpack.c.0.s8 %v160_v11  ;;  %v325_v21 = vsel %vm110_vm1, 1.0, %v393_v2  ;;  %v326_v22 = vsel %vm111_vm2, 1.0, %v393_v2  ;;  %308 = sst [smem:[#allocation8 + $0x3]] %s395_s0  ;;  %s376_s25 = scalar_lea.hbm %s508_s1, 16 }
  0x18   :  { %v42_v18 = vrot.slane %v41_v14, 2  ;;  %v48_v19 = vrot.slane %v47_v15, 2  ;;  %v123_v23 = vsub.f32 %v37_v6, %v119_v16  ;;  %v440_v27 = vshrl.u32 %v27_v0, 7  ;;  %p377_p8 = scmp.ne.s32.totalorder %s508_s1, %s376_s25  ;;  %p380_p9 = scmp.lt.u32.totalorder %s376_s25, %s508_s1 }
  0x19   :  { %v124_v24 = vand.u32 2147483647, %v122_v17  ;;  %v207_v28 = vcombine.low %v325_v21, %v326_v22  ;;  %vm136_vm6 = vcmp.gt.f32.partialorder %v325_v21, 0.0  ;;  %vm137_vm7 = vcmp.gt.f32.partialorder %v326_v22, 0.0 }
  0x1a   :  { %v43_v25 = vmax.f32 %v41_v14, %v42_v18  ;;  %v49_v26 = vmax.f32 %v47_v15, %v48_v19  ;;  %v125_v29 = vand.u32 2147483647, %v123_v23  ;;  %v443_v32 = vsub.s32 %v161_v20, %v440_v27  ;;  %p382_p10 = pnand %p380_p9, %p377_p8 }
  0x1b   :  { %vm126_vm3 = vcmp.lt.f32.partialorder %v124_v24, 1.0  ;;  %v128_v33 = vmul.f32 0.5, %v124_v24  ;;  %v327_v35 = vadd.f32 -0.5, %v124_v24  ;;  %v458_v61 = vsub.s32 0, %v440_v27 }
  0x1c   :  { %v44_v30 = vrot.slane %v43_v25, 1  ;;  %v50_v31 = vrot.slane %v49_v26, 1  ;;  %vm127_vm4 = vcmp.lt.f32.partialorder %v125_v29, 1.0  ;;  %v129_v34 = vmul.f32 0.5, %v125_v29 }
  0x1d   :  { %v328_v38 = vadd.f32 -0.5, %v125_v29  ;;  %v214_v39 = vrot.slane %v207_v28, %v443_v32  ;;  %v130_v40 = vmul.f32 %v128_v33, %v124_v24  ;;  %v461_v0 = vsub.s32 1, %v440_v27  ;;  %v155_v24 = vld [vmem:[#allocation2] sm:$0x3] }
  0x1e   :  { %v45_v36 = vmax.f32 %v43_v25, %v44_v30  ;;  %v51_v37 = vmax.f32 %v49_v26, %v50_v31  ;;  %v131_v41 = vmul.f32 %v129_v34, %v125_v29  ;;  %v204_v44 = vld [vmem:[#allocation4] sm:$0x3]  ;;  %vm240_vm8 = vcmask 1040384  }
  0x1f   :  { %v221_v45 = vrot.slane %v214_v39, %v443_v32  ;;  %v134_v46 = vsel %vm126_vm3, %v130_v40, %v327_v35  ;;  %v329_v34 = vtrunc.f32 %v432_v12 }
  0x20   :  { %v446_v42 = vsub.f32 %v34_v3, %v45_v36  ;;  %v448_v43 = vsub.f32 %v35_v4, %v51_v37  ;;  %v135_v47 = vsel %vm127_vm4, %v131_v41, %v328_v38  ;;  %v139_v50 = vsel %vm138_vm5, %v134_v46, 0.0 }
  0x21   :  { %v146_v51 = vsel %vm138_vm5, %v135_v47, 0.0  ;;  %v140_v52 = vrot.slane %v139_v50, 4  ;;  %v223_v54 = vadd.f32 %v221_v45, %v204_v44  ;;  %v331_v36 = vtrunc.f32 %v434_v13 }
  0x22   :  { %v54_v48 = vmul.f32 1.442695, %v446_v42  ;;  %v56_v49 = vmul.f32 1.442695, %v448_v43  ;;  %v147_v53 = vrot.slane %v146_v51, 4  ;;  %v330_v38 = vcvt.f32.s32 %v329_v34 }
  0x23   :  { %v141_v55 = vadd.f32 %v140_v52, %v139_v50  ;;  %224 = vst.msk [vmem:[#allocation4] sm:$0x3] %vm419_vm0, %v223_v54  ;;  %v332_v39 = vcvt.f32.s32 %v331_v36 }
  0x24   :  { %346 = vpow2.f32 %v54_v48  ;;  %v148_v56 = vadd.f32 %v147_v53, %v146_v51  ;;  %v83_v41 = vrot.slane %v330_v38, %v458_v61 }
  0x25   :  { %348 = vpow2.f32 %v56_v49  ;;  %v142_v57 = vrot.slane %v141_v55, 2  ;;  %v87_v46 = vrot.slane %v332_v39, %v458_v61 }
  0x26   :  { %v149_v58 = vrot.slane %v148_v56, 2  ;;  %vm88_vm9 = vcmp.eq.s32.totalorder %v440_v27, %v83_v41 }
  0x27   :  { %v143_v59 = vadd.f32 %v142_v57, %v141_v55  ;;  %vm89_vm10 = vcmp.eq.s32.totalorder %v440_v27, %v87_v46  ;;  %v323_v54 = vsel %vm88_vm9, 1.0, %v393_v2 }
  0x28   :  { %v150_v60 = vadd.f32 %v149_v58, %v148_v56  ;;  %v324_v56 = vsel %vm89_vm10, 1.0, %v393_v2 }
  0x29   :  { %v144_v62 = vrot.slane %v143_v59, 1 }
  0x2a   :  { %v151_v63 = vrot.slane %v150_v60, 1  ;;  %v281_v3 = vld [vmem:[#allocation4] sm:$0x3] }
  0x2b   :  { %v145_v4 = vadd.f32 %v144_v62, %v143_v59  ;;  %v286_v6 = vrot.slane %v281_v3, %v458_v61  ;;  %v290_v7 = vrot.slane %v281_v3, %v461_v0 }
  0x2c   :  { %v152_v5 = vadd.f32 %v151_v63, %v150_v60 }
  0x2d   :  { %v153_v11 = vsel %vm136_vm6, %v145_v4, 0.0  ;;  %v293_v15 = vsel %vm240_vm8, %v286_v6, 0.0  ;;  %v294_v18 = vsel %vm240_vm8, %v290_v7, 0.0 }
  0x2e   :  { %v347_v8 = vpop.eup %346  ;;  %v154_v14 = vsel %vm137_vm7, %v152_v5, 0.0  ;;  %v295_v20 = vadd.f32 %v294_v18, %v293_v15 }
  0x2f   :  { %v349_v9 = vpop.eup %348  ;;  %v58_v10 = vrot.slane %v347_v8, 4  ;;  %v158_v17 = vcombine.low %v153_v11, %v154_v14 }
  0x30   :  { %v64_v16 = vrot.slane %v349_v9, 4  ;;  %296 = vadd.xlane.f32.xlu1 %v295_v20 }
  0x31   :  { %v59_v19 = vadd.f32 %v347_v8, %v58_v10  ;;  %v165_v22 = vrot.slane %v158_v17, %v443_v32  ;;  %v180_v17 = vld [vmem:[#allocation3] sm:$0x3] }
  0x32   :  { %v65_v21 = vadd.f32 %v349_v9, %v64_v16 }
  0x33   :  { %v60_v23 = vrot.slane %v59_v19, 2  ;;  %v172_v26 = vrot.slane %v165_v22, %v443_v32 }
  0x34   :  { %v66_v25 = vrot.slane %v65_v21, 2 }
  0x35   :  { %v61_v28 = vadd.f32 %v60_v23, %v59_v19  ;;  %v174_v30 = vadd.f32 %v172_v26, %v155_v24 }
  0x36   :  { %v67_v29 = vadd.f32 %v66_v25, %v65_v21 }
  0x37   :  { %v62_v31 = vrot.slane %v61_v28, 1  ;;  %179 = vst.msk [vmem:[#allocation2] sm:$0x3] %vm419_vm0, %v174_v30 }
  0x38   :  { %v68_v33 = vrot.slane %v67_v29, 1 }
  0x39   :  { %v63_v35 = vadd.f32 %v62_v31, %v61_v28 }
  0x3a   :  { %v69_v37 = vadd.f32 %v68_v33, %v67_v29 }
  0x3b   :  { %350 = vlog2.f32 %v63_v35 }
  0x3c   :  { %352 = vlog2.f32 %v69_v37 }
  0x3e   :  { %v228_v40 = vld [vmem:[#allocation2] sm:$0x3] }
  0x3f   :  { %v233_v44 = vrot.slane %v228_v40, %v458_v61  ;;  %v237_v45 = vrot.slane %v228_v40, %v461_v0 }
  0x41   :  { %v241_v47 = vsel %vm240_vm8, %v233_v44, 0.0  ;;  %v242_v48 = vsel %vm240_vm8, %v237_v45, 0.0 }
  0x42   :  { %v243_v49 = vadd.f32 %v242_v48, %v241_v47 }
  0x44   :  { %244 = vadd.xlane.f32.xlu0 %v243_v49 }
  0x45   :  { %v351_v50 = vpop.eup %350 }
  0x46   :  { %v353_v51 = vpop.eup %352  ;;  %v71_v52 = vmul.f32 0.6931472, %v351_v50 }
  0x47   :  { %v73_v53 = vmul.f32 0.6931472, %v353_v51 }
  0x48   :  { %v74_v55 = vsub.f32 %v446_v42, %v71_v52 }
  0x49   :  { %v75_v57 = vsub.f32 %v448_v43, %v73_v53 }
  0x4a   :  { %v94_v58 = vmul.f32 %v323_v54, %v74_v55 }
  0x4b   :  { %v95_v59 = vmul.f32 %v324_v56, %v75_v57 }
  0x4c   :  { %v96_v60 = vrot.slane %v94_v58, 4 }
  0x4d   :  { %v102_v62 = vrot.slane %v95_v59, 4 }
  0x4e   :  { %v97_v63 = vadd.f32 %v96_v60, %v94_v58 }
  0x4f   :  { %v103_v3 = vadd.f32 %v102_v62, %v95_v59 }
  0x50   :  { %v98_v4 = vrot.slane %v97_v63, 2 }
  0x51   :  { %v104_v27 = vrot.slane %v103_v3, 2 }
  0x52   :  { %v99_v5 = vadd.f32 %v98_v4, %v97_v63 }
  0x53   :  { %v105_v6 = vadd.f32 %v104_v27, %v103_v3 }
  0x54   :  { %v100_v7 = vrot.slane %v99_v5, 1 }
  0x55   :  { %v106_v8 = vrot.slane %v105_v6, 1 }
  0x56   :  { %v101_v9 = vadd.f32 %v100_v7, %v99_v5 }
  0x57   :  { %v107_v10 = vadd.f32 %v106_v8, %v105_v6 }
  0x58   :  { %v108_v11 = vsub.f32 0.0, %v101_v9 }
  0x59   :  { %v109_v42 = vsub.f32 0.0, %v107_v10 }
  0x5a   :  { %v181_v2 = vmul.f32 %v108_v11, %v432_v12 }
  0x5b   :  { %v182_v43 = vmul.f32 %v109_v42, %v434_v13 }
  0x5d   :  { %v185_v14 = vcombine.low %v181_v2, %v182_v43 }
  0x5f   :  { %v192_v15 = vrot.slane %v185_v14, %v443_v32 }
  0x61   :  { %v193_v16 = vcombine.high %v192_v15, %v192_v15 }
  0x63   :  { %v200_v18 = vrot.slane %v193_v16, %v443_v32 }
  0x65   :  { %v202_v19 = vadd.f32 %v200_v18, %v180_v17 }
  0x67   :  { %203 = vst.msk [vmem:[#allocation3] sm:$0x3] %vm419_vm0, %v202_v19 }
  0x6e   :  { %v255_v20 = vld [vmem:[#allocation3] sm:$0x3] }
  0x6f   :  { %v260_v21 = vrot.slane %v255_v20, %v458_v61  ;;  %v264_v22 = vrot.slane %v255_v20, %v461_v0 }
  0x71   :  { %v267_v12 = vsel %vm240_vm8, %v260_v21, 0.0  ;;  %v268_v13 = vsel %vm240_vm8, %v264_v22, 0.0 }
  0x72   :  { %v269_v23 = vadd.f32 %v268_v13, %v267_v12 }
  0x74   :  { %270 = vadd.xlane.f32.xlu0 %v269_v23 }
  0xbd   :  { %v297_v30 = vpop.xlane.xlu1 %296 }
  0xbe   :  { %v298_v61 = vrot.slane %v297_v30, 4 }
  0xc0   :  { %v299_v31 = vadd.f32 %v298_v61, %v297_v30 }
  0xc2   :  { %v300_v0 = vrot.slane %v299_v31, 2 }
  0xc4   :  { %v301_v36 = vadd.f32 %v300_v0, %v299_v31 }
  0xc6   :  { %v302_v39 = vrot.slane %v301_v36, 1 }
  0xc8   :  { %v303_v44 = vadd.f32 %v302_v39, %v301_v36 }
  0xd1   :  { %v245_v24 = vpop.xlane.xlu0 %244 }
  0xd2   :  { %v246_v25 = vrot.slane %v245_v24, 4 }
  0xd4   :  { %v247_v32 = vadd.f32 %v246_v25, %v245_v24 }
  0xd6   :  { %v248_v26 = vrot.slane %v247_v32, 2 }
  0xd8   :  { %v249_v28 = vadd.f32 %v248_v26, %v247_v32 }
  0xda   :  { %v250_v1 = vrot.slane %v249_v28, 1 }
  0xdc   :  { %v251_v29 = vadd.f32 %v250_v1, %v249_v28 }
  0xde   :  { %333 = vpush %v251_v29 }
 0x101   :  { %v271_v33 = vpop.xlane.xlu0 %270 }
 0x102   :  { %v272_v34 = vrot.slane %v271_v33, 4 }
 0x104   :  { %v273_v35 = vadd.f32 %v272_v34, %v271_v33 }
 0x106   :  { %v274_v37 = vrot.slane %v273_v35, 2 }
 0x108   :  { %v275_v38 = vadd.f32 %v274_v37, %v273_v35 }
 0x10a   :  { %v276_v40 = vrot.slane %v275_v38, 1 }
 0x10c   :  { %v277_v41 = vadd.f32 %v276_v40, %v275_v38 }
 0x10e   :  { %335 = vpush %v277_v41 }
 0x10f   :  { %337 = vpush %v303_v44  ;;  %s334_s20 = spop %333 }
 0x110   :  { %254 = sst [smem:[#allocation8]] %s334_s20 }
 0x13f   :  { %s336_s21 = spop %335 }
 0x140   :  { %280 = sst [smem:[#allocation8 + $0x1]] %s336_s21  ;;  %s338_s22 = spop %337 }
 0x141   :  { %306 = sst [smem:[#allocation8 + $0x2]] %s338_s22 }
 0x142   :  { %385 = shalt.err (!%p382_p10)
}
 0x143   :  { %s396_s30 = smov [#allocation8]  }
 0x144   :  { %316 = dma.smem_to_hbm %s396_s30, 16, %s508_s1, [#allocation7]  }
 0x145   :  { %388 = dma.done.wait [#allocation7], 16  }
 0x146   :  { %389 = vsyncadd [#allocation7], 4294967280 }
 0x147   :  { %320 = sfence }
 0x148   :  { %321 = vsyncpa [#allocation6], 1 }
 0x149   :  { %322 = vsyncpa [#allocation7], 1 }

</bundles_post_ra>
